<compile_context>
chip_gen: v5e
topology: v5e:2x2
jax: 0.10.0
libtpu: 0.0.40
codegen_flags: <defaults>
</compile_context>

<pallas_src>
import functools

import jax
import jax.numpy as jnp
from jax.experimental import pallas as pl
from jax.experimental.pallas import tpu as pltpu


def _round_up(v, m):
    return (v + m - 1) // m * m


def _physical_vmem_bytes():
    """Per-core physical VMEM; conservative v7x fallback if the query fails."""
    try:
        info = pltpu.get_tpu_info()
        for attr in ("vmem_capacity_bytes", "vmem_size_bytes", "vmem_bytes"):
            v = getattr(info, attr, None)
            if v:
                return int(v)
    except Exception:
        pass
    return 64 * 1024 * 1024


def _vmem_bytes_est(tm, tk, kt, cp, x_bytes, out_bytes, w_bytes):
    wbuf = 1 if kt == 1 else 2                  # Buffered(1) when weights resident
    weights = 2 * cp * tk * w_bytes * wbuf      # W1 block + W2 block
    vecs = 3 * cp * 4 + 2 * tk * 4              # packed gamma/beta/b2 + b1 block
    row_in = (3 if kt == 1 else 2) * tm * cp * x_bytes
    row_out = 2 * tm * cp * out_bytes
    scratch = 2 * tm * cp * 4                   # xn + acc accumulators (f32)
    live = 2 * tm * cp * 4 + 2 * tm * tk * 4    # in-flight f32 temporaries (fudge)
    return weights + vecs + row_in + row_out + scratch + live


def _choose_tiles(n, cp, x_bytes, out_bytes, w_bytes, work_cap, sub,
                  force_kt=None):
    """Pick (tm, tk, kt): token tile, hidden-channel block, #hidden blocks."""
    m = cp // 128
    kt_options = [d for d in range(1, m + 1) if m % d == 0]
    if force_kt is not None:
        if force_kt not in kt_options:
            raise ValueError(
                f"force_hidden_blocks={force_kt} must divide Cp/128={m}")
        kt_options = [force_kt]

    tm_cap = max(sub, _round_up(min(n, 1024), sub))
    # MXU-friendly multiples of 256 first, then multiples of the sublane pack.
    cands = [c for c in (1024, 768, 512, 256) if c <= tm_cap]
    cands += list(range(min(tm_cap, 256 - sub), 0, -sub))

    best = None
    for kt in kt_options:
        tk = cp // kt
        tm = next((c for c in cands
                   if _vmem_bytes_est(c, tk, kt, cp, x_bytes, out_bytes,
                                      w_bytes) <= work_cap), None)
        if tm is not None:
            best = (tm, tk, kt)
            if tm >= min(256, tm_cap):   # full-width MXU (or all rows) reached
                break
    if best is None:                      # extreme case: smallest everything
        kt = kt_options[-1]
        best = (sub, cp // kt, kt)
    return best


def _resblock_kernel(x_ref, vec_ref, w1_ref, b1_ref, w2_ref, o_ref,
                     xn_ref, acc_ref, *, eps, c_valid, gelu_approx):
    j = pl.program_id(1)

    @pl.when(j == 0)
    def _():
        # LayerNorm over the true channel count.  Padded lanes are masked
        # in-kernel so correctness does not rely on the wrapper zero-padding.
        x = x_ref[...].astype(jnp.float32)
        cp = x.shape[-1]
        if cp != c_valid:
            lane = jax.lax.broadcasted_iota(jnp.int32, x.shape, 1)
            x = jnp.where(lane < c_valid, x, 0.0)
        inv_c = 1.0 / c_valid
        mean = jnp.sum(x, axis=-1, keepdims=True) * inv_c
        ctr = x - mean
        if cp != c_valid:
            lane = jax.lax.broadcasted_iota(jnp.int32, x.shape, 1)
            ctr = jnp.where(lane < c_valid, ctr, 0.0)
        var = jnp.sum(ctr * ctr, axis=-1, keepdims=True) * inv_c
        xn = ctr * jax.lax.rsqrt(var + eps)
        # vec rows: 0=gamma, 1=beta, 2=b2 (all zero-padded past c_valid).
        xn_ref[...] = xn * vec_ref[0:1, :] + vec_ref[1:2, :]
        acc_ref[...] = jnp.zeros(acc_ref.shape, acc_ref.dtype)

    # Hidden-channel block j of Linear -> GELU -> Linear, f32 accumulation.
    xn = xn_ref[...]
    h = jnp.dot(xn.astype(w1_ref.dtype), w1_ref[...],
                preferred_element_type=jnp.float32) + b1_ref[...]
    h = jax.nn.gelu(h, approximate=gelu_approx)
    acc_ref[...] += jnp.dot(h.astype(w2_ref.dtype), w2_ref[...],
                            preferred_element_type=jnp.float32)

    @pl.when(j == pl.num_programs(1) - 1)
    def _():
        # Residual from the *normalized* input, as in the PyTorch module.
        o_ref[...] = (xn_ref[...] + acc_ref[...]
                      + vec_ref[2:3, :]).astype(o_ref.dtype)


def prepare_simple_res_block_params(gamma, beta, w1, b1, w2, b2, *,
                                    mxu_dtype=jnp.bfloat16):
    """One-time parameter transform (transpose / cast / lane-pad).

    Do this once and cache the result; it must not sit in the per-token-batch
    hot path (at C=4096 it is ~100 MiB of HBM traffic per call otherwise)."""
    C = int(jnp.shape(gamma)[-1])
    Cp = _round_up(max(C, 128), 128)
    cpad = Cp - C

    def pad1(v):
        return jnp.pad(jnp.asarray(v, jnp.float32), (0, cpad))

    vecs = jnp.stack([pad1(gamma), pad1(beta), pad1(b2)], axis=0)       # (3, Cp)
    b1p = pad1(b1).reshape(1, Cp)
    # PyTorch Linear stores (out, in); kernel computes x @ W, so transpose.
    w1p = jnp.pad(jnp.asarray(w1).T.astype(mxu_dtype), ((0, cpad), (0, cpad)))
    w2p = jnp.pad(jnp.asarray(w2).T.astype(mxu_dtype), ((0, cpad), (0, cpad)))
    return {"c": C, "cp": Cp, "vecs": vecs, "b1": b1p, "w1": w1p, "w2": w2p}


def simple_res_block(x, params, *, eps=1e-5, gelu_approximate=None,
                     force_hidden_blocks=None):
    """x: (..., C).  `params` from prepare_simple_res_block_params."""
    C, Cp = params["c"], params["cp"]
    orig_shape = x.shape
    assert orig_shape[-1] == C, "channel mismatch with prepared params"
    x2 = x.reshape(-1, C)
    N = x2.shape[0]
    cpad = Cp - C
    if cpad:
        x2 = jnp.pad(x2, ((0, 0), (0, cpad)))     # lane-dense channel dim

    x_bytes = jnp.dtype(x.dtype).itemsize
    out_bytes = x_bytes
    w_bytes = jnp.dtype(params["w1"].dtype).itemsize
    sub = {4: 8, 2: 16, 1: 32}.get(x_bytes, 8)     # native sublane packing

    phys = _physical_vmem_bytes()
    work_cap = int(phys * 0.75)                    # leave compiler headroom
    tm, tk, kt = _choose_tiles(N, Cp, x_bytes, out_bytes, w_bytes, work_cap,
                               sub, force_kt=force_hidden_blocks)

    if gelu_approximate is None:
        # tanh-GELU runs on the (otherwise idle) EUP slot; use it on the
        # low-precision MXU path.  Exact erf (== nn.GELU()) on the f32 path.
        gelu_approximate = params["w1"].dtype != jnp.float32

    grid = (pl.cdiv(N, tm), kt)

    def _specs(use_hints):
        const_pm = pl.Buffered(1) if use_hints else None
        w_pm = (pl.Buffered(1) if kt == 1 else None) if use_hints else None
        row_pm = (pl.Buffered(3) if (kt == 1 and Cp <= 1024) else None) \
            if use_hints else None

        def spec(shape, imap, pm):
            if pm is None:
                return pl.BlockSpec(shape, imap)
            return pl.BlockSpec(shape, imap, pipeline_mode=pm)

        in_specs = [
            spec((tm, Cp), lambda i, j: (i, 0), row_pm),    # x rows
            spec((3, Cp), lambda i, j: (0, 0), const_pm),   # gamma/beta/b2
            spec((Cp, tk), lambda i, j: (0, j), w_pm),      # W1 hidden block
            spec((1, tk), lambda i, j: (0, j), w_pm),       # b1 hidden block
            spec((tk, Cp), lambda i, j: (j, 0), w_pm),      # W2 hidden block
        ]
        out_spec = pl.BlockSpec((tm, Cp), lambda i, j: (i, 0))
        return in_specs, out_spec

    cost = pl.CostEstimate(
        flops=int(4 * N * Cp * Cp + 12 * N * Cp),
        transcendentals=int(N * Cp + N),
        bytes_accessed=int(N * Cp * (x_bytes + out_bytes)
                           + 2 * Cp * Cp * w_bytes + 4 * Cp * 4),
    )
    vmem_est = _vmem_bytes_est(tm, tk, kt, Cp, x_bytes, out_bytes, w_bytes)
    vmem_limit = int(min(phys * 0.85,
                         max(32 * 1024 * 1024, 1.25 * vmem_est)))

    def _run(use_hints):
        in_specs, out_spec = _specs(use_hints)
        return pl.pallas_call(
            functools.partial(_resblock_kernel, eps=eps, c_valid=C,
                              gelu_approx=bool(gelu_approximate)),
            out_shape=jax.ShapeDtypeStruct((N, Cp), x.dtype),
            grid_spec=pltpu.PrefetchScalarGridSpec(
                num_scalar_prefetch=0,
                grid=grid,
                in_specs=in_specs,
                out_specs=out_spec,
                scratch_shapes=[pltpu.VMEM((tm, Cp), jnp.float32),   # xn
                                pltpu.VMEM((tm, Cp), jnp.float32)],  # acc
            ),
            compiler_params=pltpu.CompilerParams(
                dimension_semantics=("parallel", "arbitrary"),
                vmem_limit_bytes=vmem_limit,
            ),
            cost_estimate=cost,
        )(x2, params["vecs"], params["w1"], params["b1"], params["w2"])

    try:
        out = _run(True)
    except Exception:
        # pipeline_mode / pl.Buffered hints unsupported on this JAX version;
        # the kernel is identical without them (just default 2-deep buffers).
        out = _run(False)

    if cpad:
        out = out[:, :C]
    return out.reshape(orig_shape)


def _reference(x, gamma, beta, w1, b1, w2, b2, eps=1e-5):
    xf = x.astype(jnp.float32)
    mean = jnp.mean(xf, axis=-1, keepdims=True)
    var = jnp.mean((xf - mean) ** 2, axis=-1, keepdims=True)
    xn = (xf - mean) / jnp.sqrt(var + eps) * gamma + beta
    h = jax.nn.gelu(xn @ w1.T + b1, approximate=False)
    y = h @ w2.T + b2
    return (xn + y).astype(x.dtype)


def _make_params(keys, C):
    kg, kb, kw1, kb1, kw2, kb2 = keys
    bound = 1.0 / float(C) ** 0.5
    gamma = 1.0 + 0.1 * jax.random.normal(kg, (C,), jnp.float32)
    beta = 0.05 * jax.random.normal(kb, (C,), jnp.float32)
    w1 = jax.random.uniform(kw1, (C, C), jnp.float32, -bound, bound)
    b1 = jax.random.uniform(kb1, (C,), jnp.float32, -bound, bound)
    w2 = jax.random.uniform(kw2, (C, C), jnp.float32, -bound, bound)
    b2 = jax.random.uniform(kb2, (C,), jnp.float32, -bound, bound)
    return gamma, beta, w1, b1, w2, b2


if __name__ == "__main__":
    key = jax.random.PRNGKey(0)
    keys = jax.random.split(key, 14)

    # --- Main test: batch=2, seq=8, channels=32 ------------------------------
    B, S, C = 2, 8, 32
    x = jax.random.normal(keys[0], (B, S, C), dtype=jnp.float32)
    gamma, beta, w1, b1, w2, b2 = _make_params(keys[1:7], C)
    ref = _reference(x, gamma, beta, w1, b1, w2, b2)

    # Perf path: bf16 MXU operands (f32 accumulation), tanh GELU, weights
    # prepared once outside the hot path.
    p_bf16 = prepare_simple_res_block_params(gamma, beta, w1, b1, w2, b2,
                                             mxu_dtype=jnp.bfloat16)
    out = simple_res_block(x, p_bf16)
    jax.block_until_ready(out)
    assert out.shape == x.shape
    assert jnp.allclose(out, ref, atol=5e-2, rtol=5e-2), "bf16 path mismatch"

    # f32 path with exact GELU must match the reference tightly.
    p_f32 = prepare_simple_res_block_params(gamma, beta, w1, b1, w2, b2,
                                            mxu_dtype=jnp.float32)
    out_f32 = simple_res_block(x, p_f32)
    jax.block_until_ready(out_f32)
    assert jnp.allclose(out_f32, ref, atol=1e-5, rtol=1e-5), "f32 path mismatch"

    # --- Hidden-channel-blocked (large-C) path, forced at a small size -------
    C2 = 256
    x2 = jax.random.normal(keys[7], (2, 4, C2), dtype=jnp.float32)
    g2, be2, w1b, b1b, w2b, b2b = _make_params(keys[8:14], C2)
    ref2 = _reference(x2, g2, be2, w1b, b1b, w2b, b2b)
    p2 = prepare_simple_res_block_params(g2, be2, w1b, b1b, w2b, b2b,
                                         mxu_dtype=jnp.float32)
    out2 = simple_res_block(x2, p2, force_hidden_blocks=2)
    jax.block_until_ready(out2)
    assert out2.shape == x2.shape
    assert jnp.allclose(out2, ref2, atol=1e-4, rtol=1e-4), \
        "hidden-blocked path mismatch"

    print("KERNEL_OK")
</pallas_src>

<mosaic_0001>
module attributes {stable_mosaic.version = 11 : i64} {
  func.func @_resblock_kernel(%arg0: i32, %arg1: i32, %arg2: memref<16x128xf32, #tpu.memory_space<vmem>>, %arg3: memref<3x128xf32, #tpu.memory_space<vmem>>, %arg4: memref<128x128xbf16, #tpu.memory_space<vmem>>, %arg5: memref<1x128xf32, #tpu.memory_space<vmem>>, %arg6: memref<128x128xbf16, #tpu.memory_space<vmem>>, %arg7: memref<16x128xf32, #tpu.memory_space<vmem>>, %arg8: memref<16x128xf32, #tpu.memory_space<vmem>>, %arg9: memref<16x128xf32, #tpu.memory_space<vmem>>) attributes {dimension_semantics = [#tpu.dimension_semantics<parallel>, #tpu.dimension_semantics<arbitrary>], iteration_bounds = array<i64: 1, 1>, scalar_prefetch = 0 : i64, scratch_operands = 2 : i64, tpu.core_type = #tpu.core_type<tc>, window_params = [{transform_indices = @transform_0, window_bounds = array<i64: 16, 128>}, {pipeline_mode = #tpu.pipeline_mode<synchronous>, transform_indices = @transform_1, window_bounds = array<i64: 3, 128>}, {transform_indices = @transform_2, window_bounds = array<i64: 128, 128>}, {transform_indices = @transform_3, window_bounds = array<i64: 1, 128>}, {transform_indices = @transform_4, window_bounds = array<i64: 128, 128>}, {transform_indices = @transform_5, window_bounds = array<i64: 16, 128>}]} {
    %c0_i32 = arith.constant 0 : i32
    %0 = arith.cmpi eq, %arg1, %c0_i32 : i32
    %1 = arith.extui %0 : i1 to i32
    %c0_i32_0 = arith.constant 0 : i32
    %2 = arith.cmpi ne, %1, %c0_i32_0 : i32
    scf.if %2 {
      %c0_19 = arith.constant 0 : index
      %c0_20 = arith.constant 0 : index
      %32 = vector.load %arg2[%c0_19, %c0_20] : memref<16x128xf32, #tpu.memory_space<vmem>>, vector<16x128xf32>
      %33 = tpu.iota {dimensions = array<i32: 1>} : vector<16x128xi32>
      %c32_i32 = arith.constant 32 : i32
      %34 = vector.broadcast %c32_i32 : i32 to vector<16x128xi32>
      %35 = arith.cmpi slt, %33, %34 : vector<16x128xi32>
      %cst_21 = arith.constant 0.000000e+00 : f32
      %36 = vector.broadcast %cst_21 : f32 to vector<16x128xf32>
      %37 = arith.select %35, %32, %36 : vector<16x128xi1>, vector<16x128xf32>
      %cst_22 = arith.constant dense<0.000000e+00> : vector<16xf32>
      %38 = vector.multi_reduction <add>, %37, %cst_22 [1] : vector<16x128xf32> to vector<16xf32>
      %39 = vector.shape_cast %38 : vector<16xf32> to vector<16x1xf32>
      %cst_23 = arith.constant 3.125000e-02 : f32
      %40 = vector.broadcast %cst_23 : f32 to vector<16x1xf32>
      %41 = arith.mulf %39, %40 : vector<16x1xf32>
      %42 = vector.broadcast %41 : vector<16x1xf32> to vector<16x128xf32>
      %43 = arith.subf %37, %42 : vector<16x128xf32>
      %44 = tpu.iota {dimensions = array<i32: 1>} : vector<16x128xi32>
      %c32_i32_24 = arith.constant 32 : i32
      %45 = vector.broadcast %c32_i32_24 : i32 to vector<16x128xi32>
      %46 = arith.cmpi slt, %44, %45 : vector<16x128xi32>
      %cst_25 = arith.constant 0.000000e+00 : f32
      %47 = vector.broadcast %cst_25 : f32 to vector<16x128xf32>
      %48 = arith.select %46, %43, %47 : vector<16x128xi1>, vector<16x128xf32>
      %49 = arith.mulf %48, %48 : vector<16x128xf32>
      %cst_26 = arith.constant dense<0.000000e+00> : vector<16xf32>
      %50 = vector.multi_reduction <add>, %49, %cst_26 [1] : vector<16x128xf32> to vector<16xf32>
      %51 = vector.shape_cast %50 : vector<16xf32> to vector<16x1xf32>
      %cst_27 = arith.constant 3.125000e-02 : f32
      %52 = vector.broadcast %cst_27 : f32 to vector<16x1xf32>
      %53 = arith.mulf %51, %52 : vector<16x1xf32>
      %cst_28 = arith.constant 9.99999974E-6 : f32
      %54 = vector.broadcast %cst_28 : f32 to vector<16x1xf32>
      %55 = arith.addf %53, %54 : vector<16x1xf32>
      %56 = math.rsqrt %55 : vector<16x1xf32>
      %57 = vector.broadcast %56 : vector<16x1xf32> to vector<16x128xf32>
      %58 = arith.mulf %48, %57 : vector<16x128xf32>
      %c0_29 = arith.constant 0 : index
      %c0_30 = arith.constant 0 : index
      %59 = vector.load %arg3[%c0_29, %c0_30] : memref<3x128xf32, #tpu.memory_space<vmem>>, vector<1x128xf32>
      %60 = vector.broadcast %59 : vector<1x128xf32> to vector<16x128xf32>
      %61 = arith.mulf %58, %60 : vector<16x128xf32>
      %c1 = arith.constant 1 : index
      %c0_31 = arith.constant 0 : index
      %62 = vector.load %arg3[%c1, %c0_31] : memref<3x128xf32, #tpu.memory_space<vmem>>, vector<1x128xf32>
      %63 = vector.broadcast %62 : vector<1x128xf32> to vector<16x128xf32>
      %64 = arith.addf %61, %63 : vector<16x128xf32>
      %c0_32 = arith.constant 0 : index
      %c0_33 = arith.constant 0 : index
      %65 = vector.load %arg8[%c0_32, %c0_33] : memref<16x128xf32, #tpu.memory_space<vmem>>, vector<16x128xf32>
      tpu.vector_store %arg8[%c0_32, %c0_33], %64 {strides = array<i32>} : memref<16x128xf32, #tpu.memory_space<vmem>>, vector<16x128xf32>,
      %cst_34 = arith.constant 0.000000e+00 : f32
      %66 = vector.broadcast %cst_34 : f32 to vector<16x128xf32>
      %c0_35 = arith.constant 0 : index
      %c0_36 = arith.constant 0 : index
      %67 = vector.load %arg9[%c0_35, %c0_36] : memref<16x128xf32, #tpu.memory_space<vmem>>, vector<16x128xf32>
      tpu.vector_store %arg9[%c0_35, %c0_36], %66 {strides = array<i32>} : memref<16x128xf32, #tpu.memory_space<vmem>>, vector<16x128xf32>,
    } else {
    }
    %c0 = arith.constant 0 : index
    %c0_1 = arith.constant 0 : index
    %3 = vector.load %arg8[%c0, %c0_1] : memref<16x128xf32, #tpu.memory_space<vmem>>, vector<16x128xf32>
    %4 = arith.truncf %3 : vector<16x128xf32> to vector<16x128xbf16>
    %c0_2 = arith.constant 0 : index
    %c0_3 = arith.constant 0 : index
    %5 = vector.load %arg4[%c0_2, %c0_3] : memref<128x128xbf16, #tpu.memory_space<vmem>>, vector<128x128xbf16>
    %cst = arith.constant dense<0.000000e+00> : vector<16x128xf32>
    %6 = tpu.matmul %4, %5, %cst {dimension_numbers = #tpu.dot_dimension_numbers<[1], [0], [0], [1], [0, 0, 1, 1], [], []>} : vector<16x128xbf16>, vector<128x128xbf16>, vector<16x128xf32> -> vector<16x128xf32>
    %c0_4 = arith.constant 0 : index
    %c0_5 = arith.constant 0 : index
    %7 = vector.load %arg5[%c0_4, %c0_5] : memref<1x128xf32, #tpu.memory_space<vmem>>, vector<1x128xf32>
    %8 = vector.broadcast %7 : vector<1x128xf32> to vector<16x128xf32>
    %9 = arith.addf %6, %8 : vector<16x128xf32>
    %10 = arith.mulf %9, %9 : vector<16x128xf32>
    %11 = arith.mulf %9, %10 : vector<16x128xf32>
    %cst_6 = arith.constant 4.471500e-02 : f32
    %12 = vector.broadcast %cst_6 : f32 to vector<16x128xf32>
    %13 = arith.mulf %12, %11 : vector<16x128xf32>
    %14 = arith.addf %9, %13 : vector<16x128xf32>
    %cst_7 = arith.constant 0.797884583 : f32
    %15 = vector.broadcast %cst_7 : f32 to vector<16x128xf32>
    %16 = arith.mulf %15, %14 : vector<16x128xf32>
    %17 = math.tanh %16 : vector<16x128xf32>
    %cst_8 = arith.constant 1.000000e+00 : f32
    %18 = vector.broadcast %cst_8 : f32 to vector<16x128xf32>
    %19 = arith.addf %18, %17 : vector<16x128xf32>
    %cst_9 = arith.constant 5.000000e-01 : f32
    %20 = vector.broadcast %cst_9 : f32 to vector<16x128xf32>
    %21 = arith.mulf %20, %19 : vector<16x128xf32>
    %22 = arith.mulf %9, %21 : vector<16x128xf32>
    %c0_10 = arith.constant 0 : index
    %c0_11 = arith.constant 0 : index
    %23 = vector.load %arg9[%c0_10, %c0_11] : memref<16x128xf32, #tpu.memory_space<vmem>>, vector<16x128xf32>
    %24 = arith.truncf %22 : vector<16x128xf32> to vector<16x128xbf16>
    %c0_12 = arith.constant 0 : index
    %c0_13 = arith.constant 0 : index
    %25 = vector.load %arg6[%c0_12, %c0_13] : memref<128x128xbf16, #tpu.memory_space<vmem>>, vector<128x128xbf16>
    %cst_14 = arith.constant dense<0.000000e+00> : vector<16x128xf32>
    %26 = tpu.matmul %24, %25, %cst_14 {dimension_numbers = #tpu.dot_dimension_numbers<[1], [0], [0], [1], [0, 0, 1, 1], [], []>} : vector<16x128xbf16>, vector<128x128xbf16>, vector<16x128xf32> -> vector<16x128xf32>
    %27 = arith.addf %23, %26 : vector<16x128xf32>
    %c0_15 = arith.constant 0 : index
    %c0_16 = arith.constant 0 : index
    %28 = vector.load %arg9[%c0_15, %c0_16] : memref<16x128xf32, #tpu.memory_space<vmem>>, vector<16x128xf32>
    tpu.vector_store %arg9[%c0_15, %c0_16], %27 {strides = array<i32>} : memref<16x128xf32, #tpu.memory_space<vmem>>, vector<16x128xf32>,
    %c0_i32_17 = arith.constant 0 : i32
    %29 = arith.cmpi eq, %arg1, %c0_i32_17 : i32
    %30 = arith.extui %29 : i1 to i32
    %c0_i32_18 = arith.constant 0 : i32
    %31 = arith.cmpi ne, %30, %c0_i32_18 : i32
    scf.if %31 {
      %c0_19 = arith.constant 0 : index
      %c0_20 = arith.constant 0 : index
      %32 = vector.load %arg8[%c0_19, %c0_20] : memref<16x128xf32, #tpu.memory_space<vmem>>, vector<16x128xf32>
      %c0_21 = arith.constant 0 : index
      %c0_22 = arith.constant 0 : index
      %33 = vector.load %arg9[%c0_21, %c0_22] : memref<16x128xf32, #tpu.memory_space<vmem>>, vector<16x128xf32>
      %34 = arith.addf %32, %33 : vector<16x128xf32>
      %c2 = arith.constant 2 : index
      %c0_23 = arith.constant 0 : index
      %35 = vector.load %arg3[%c2, %c0_23] : memref<3x128xf32, #tpu.memory_space<vmem>>, vector<1x128xf32>
      %36 = vector.broadcast %35 : vector<1x128xf32> to vector<16x128xf32>
      %37 = arith.addf %34, %36 : vector<16x128xf32>
      %c0_24 = arith.constant 0 : index
      %c0_25 = arith.constant 0 : index
      %38 = vector.load %arg7[%c0_24, %c0_25] : memref<16x128xf32, #tpu.memory_space<vmem>>, vector<16x128xf32>
      tpu.vector_store %arg7[%c0_24, %c0_25], %37 {strides = array<i32>} : memref<16x128xf32, #tpu.memory_space<vmem>>, vector<16x128xf32>,
    } else {
    }
    return
  }
  func.func @transform_0(%arg0: i32, %arg1: i32) -> (i32, i32) {
    %c0_i32 = arith.constant 0 : i32
    %c0_i32_0 = arith.constant 0 : i32
    return %arg0, %c0_i32 : i32, i32
  }
  func.func @transform_1(%arg0: i32, %arg1: i32) -> (i32, i32) {
    %c0_i32 = arith.constant 0 : i32
    %c0_i32_0 = arith.constant 0 : i32
    %c0_i32_1 = arith.constant 0 : i32
    return %c0_i32, %c0_i32_0 : i32, i32
  }
  func.func @transform_2(%arg0: i32, %arg1: i32) -> (i32, i32) {
    %c0_i32 = arith.constant 0 : i32
    %c0_i32_0 = arith.constant 0 : i32
    return %c0_i32, %arg1 : i32, i32
  }
  func.func @transform_3(%arg0: i32, %arg1: i32) -> (i32, i32) {
    %c0_i32 = arith.constant 0 : i32
    %c0_i32_0 = arith.constant 0 : i32
    return %c0_i32, %arg1 : i32, i32
  }
  func.func @transform_4(%arg0: i32, %arg1: i32) -> (i32, i32) {
    %c0_i32 = arith.constant 0 : i32
    %c0_i32_0 = arith.constant 0 : i32
    return %arg1, %c0_i32 : i32, i32
  }
  func.func @transform_5(%arg0: i32, %arg1: i32) -> (i32, i32) {
    %c0_i32 = arith.constant 0 : i32
    %c0_i32_0 = arith.constant 0 : i32
    return %arg0, %c0_i32 : i32, i32
  }
}

</mosaic_0001>

<bundles_post_ra>
// kernel: tpu_custom_call.1
= control target key start
LH: loop header
LB: loop body
LE: loop exit
PB: predicated region body
PF: predicated region fallthrough
CT: control target
= control target key end

     0   :  { %10 = vsyncpa [#allocation5], 0  ;;  %s667_s0 = inlined_call_operand.hbm [shape: f32[16,128], index: 0, kind: input, shape index: {}]   ;;  %s668_s1 = inlined_call_operand.hbm [shape: f32[3,128], index: 1, kind: input, shape index: {}]   ;;  %s669_s2 = inlined_call_operand.hbm [shape: bf16[128,128], index: 2, kind: input, shape index: {}]   ;;  %s670_s3 = inlined_call_operand.vmem [shape: f32[1,128], index: 3, kind: input, shape index: {}]   ;;  %s671_s4 = inlined_call_operand.hbm [shape: bf16[128,128], index: 4, kind: input, shape index: {}]   ;;  %s672_s5 = inlined_call_operand.hbm [shape: f32[16,128], index: 5, kind: output, shape index: {}]  }
   0x1   :  { %11 = vsyncpa [#allocation8], 0 }
   0x2   :  { %12 = vsyncpa [#allocation11], 0  ;;  %s32_s20 = sshll.u32 %s668_s1, 4  ;;  %s33_s20 = int_to_ptr.hbm [resolvable:$true] %s32_s20 }
   0x3   :  { %13 = vsyncpa [#allocation6], 0  ;;  %s600_s21 = smov [#allocation7]   ;;  %s18_s25 = sshll.u32 %s667_s0, 4  ;;  %s19_s25 = int_to_ptr.hbm [resolvable:$true] %s18_s25 }
   0x4   :  { %s34_s22 = sshll.u32 %s600_s21, 4  ;;  %s601_s26 = smov [#allocation4]   ;;  %s35_s22 = int_to_ptr.vmem [resolvable:$true] %s34_s22 }
   0x5   :  { %37 = dma.hbm_to_vmem [thread:$0]  %s33_s20, 64, %s35_s22, [#allocation8]  }
   0x6   :  { %s20_s27 = sshll.u32 %s601_s26, 4  ;;  %s602_s28 = smov 128   ;;  %s21_s27 = int_to_ptr.vmem [resolvable:$true] %s20_s27 }
   0x7   :  { %s603_s29 = smov 8   ;;  %s42_s6 = sshll.u32 %s669_s2, 4  ;;  %s43_s6 = int_to_ptr.hbm [resolvable:$true] %s42_s6 }
   0x8   :  { %26 = dma.hbm_to_vmem [thread:$0]  %s19_s25, 256, %s21_s27, [#allocation5], %s602_s28, %s602_s28, %s603_s29  }
   0x9   :  { %s604_s7 = smov [#allocation9]   ;;  %s57_s10 = sshll.u32 %s671_s4, 4  ;;  %s58_s10 = int_to_ptr.hbm [resolvable:$true] %s57_s10 }
   0xa   :  { %s44_s8 = sshll.u32 %s604_s7, 4  ;;  %s605_s11 = smov 64   ;;  %s45_s8 = int_to_ptr.vmem [resolvable:$true] %s44_s8 }
   0xb   :  { %s606_s12 = smov 4   ;;  %s607_s13 = smov [#allocation10]  }
   0xc   :  { %50 = dma.hbm_to_vmem [thread:$0]  %s43_s6, 1024, %s45_s8, [#allocation8], %s605_s11, %s605_s11, %s606_s12  }
   0xd   :  { %s59_s14 = sshll.u32 %s607_s13, 4  ;;  %s60_s14 = int_to_ptr.vmem [resolvable:$true] %s59_s14 }
   0xe   :  { %65 = dma.hbm_to_vmem [thread:$0]  %s58_s10, 1024, %s60_s14, [#allocation11], %s605_s11, %s605_s11, %s606_s12  }
   0xf   :  { %592 = dma.done.wait [#allocation5], 256  }
  0x10   :  { %593 = vsyncadd [#allocation5], 4294967040 }
  0x11   :  { %594 = dma.done.wait [#allocation8], 1088  }
  0x12   :  { %595 = vsyncadd [#allocation8], 4294966208 }
  0x13   :  { %596 = dma.done.wait [#allocation11], 1024  }
  0x14   :  { %597 = vsyncadd [#allocation11], 4294966272  ;;  %v88_v0 = vlaneseq  ;;  %v86_v2 = vld [vmem:[#allocation4] sm:$0xff]  ;;  %v87_v4 = vld [vmem:[#allocation4 + $0x8] sm:$0xff]  ;;  %s356_s18 = sshll.u32 %s672_s5, 4  ;;  %s357_s18 = int_to_ptr.hbm [resolvable:$true] %s356_s18 }
  0x15   :  { %v442_v16 = vld [vmem:[#allocation9 + $0x38] sm:$0xff]  ;;  %v441_v17 = vld [vmem:[#allocation9 + $0x30] sm:$0xff]  ;;  %v440_v18 = vld [vmem:[#allocation9 + $0x28] sm:$0xff] }
  0x16   :  { %v89_v1 = vand.u32 127, %v88_v0  ;;  %218 = vmatpush.bf16.msra.mxu0 %v442_v16  ;;  %v439_v19 = vld [vmem:[#allocation9 + $0x20] sm:$0xff]  ;;  %v438_v20 = vld [vmem:[#allocation9 + $0x18] sm:$0xff]  ;;  %v437_v21 = vld [vmem:[#allocation9 + $0x10] sm:$0xff] }
  0x17   :  { %v436_v22 = vld [vmem:[#allocation9 + $0x8] sm:$0xff]  ;;  %v435_v24 = vld [vmem:[#allocation9] sm:$0xff]  ;;  %v460_v43 = vld [vmem:[#allocation7] ss:$0 sm:$0xff] }
  0x18   :  { %vm90_vm0 = vcmp.lt.s32.totalorder %v89_v1, 32  ;;  %v461_v48 = vld [vmem:[#allocation7 + $0x1] ss:$0 sm:$0xff]  ;;  %v449_v54 = vld [vmem:[#allocation10 + $0x30] sm:$0xff]  ;;  %v448_v55 = vld [vmem:[#allocation10 + $0x28] sm:$0xff] }
  0x19   :  { %v91_v3 = vsel %vm90_vm0, %v86_v2, 0.0  ;;  %v92_v5 = vsel %vm90_vm0, %v87_v4, 0.0  ;;  %v450_v53 = vld [vmem:[#allocation10 + $0x38] sm:$0xff]  ;;  %v447_v56 = vld [vmem:[#allocation10 + $0x20] sm:$0xff]  ;;  %v445_v58 = vld [vmem:[#allocation10 + $0x10] sm:$0xff] }
  0x1a   :  { %93 = vadd.xlane.f32.xlu0 %v91_v3  ;;  %219 = vmatpush.bf16.msra.mxu0 %v441_v17  ;;  %v446_v57 = vld [vmem:[#allocation10 + $0x18] sm:$0xff]  ;;  %v444_v59 = vld [vmem:[#allocation10 + $0x8] sm:$0xff]  ;;  %v443_v61 = vld [vmem:[#allocation10] sm:$0xff] }
  0x1b   :  { %317 = vmatpush.bf16.msra.mxu1 %v450_v53  ;;  %v462_v60 = vld [vmem:[%s670_s3] ss:$0 sm:$0xff]  ;;  %s608_s3 = smov [#allocation12]  }
  0x1c   :  { %s354_s15 = sshll.u32 %s608_s3, 4  ;;  %s355_s15 = int_to_ptr.vmem [resolvable:$true] %s354_s15 }
  0x1e   :  { %220 = vmatpush.bf16.msra.mxu0 %v440_v18 }
  0x1f   :  { %318 = vmatpush.bf16.msra.mxu1 %v449_v54 }
  0x22   :  { %95 = vadd.xlane.f32.xlu0 %v92_v5  ;;  %221 = vmatpush.bf16.msra.mxu0 %v439_v19 }
  0x23   :  { %319 = vmatpush.bf16.msra.mxu1 %v448_v55 }
  0x26   :  { %222 = vmatpush.bf16.msra.mxu0 %v438_v20 }
  0x27   :  { %320 = vmatpush.bf16.msra.mxu1 %v447_v56 }
  0x2a   :  { %223 = vmatpush.bf16.msra.mxu0 %v437_v21  ;;  %v463_v21 = vld [vmem:[#allocation7 + $0x2] ss:$0 sm:$0xff] }
  0x2b   :  { %321 = vmatpush.bf16.msra.mxu1 %v446_v57 }
  0x2e   :  { %224 = vmatpush.bf16.msra.mxu0 %v436_v22 }
  0x2f   :  { %322 = vmatpush.bf16.msra.mxu1 %v445_v58 }
  0x32   :  { %225 = vmatpush.bf16.msra.mxu0 %v435_v24 }
  0x33   :  { %323 = vmatpush.bf16.msra.mxu1 %v444_v59 }
  0x37   :  { %324 = vmatpush.bf16.msra.mxu1 %v443_v61 }
  0x8d   :  { %v94_v6 = vpop.xlane.xlu0 %93 }
  0x8e   :  { %v97_v7 = vmul.f32 0.03125, %v94_v6 }
  0x90   :  { %v99_v8 = vsub.f32 %v91_v3, %v97_v7 }
  0x92   :  { %v101_v9 = vsel %vm90_vm0, %v99_v8, 0.0 }
  0x93   :  { %v103_v10 = vmul.f32 %v101_v9, %v101_v9 }
  0x95   :  { %105 = vadd.xlane.f32.xlu1 %v103_v10  ;;  %v96_v11 = vpop.xlane.xlu0 %95 }
  0x96   :  { %v98_v12 = vmul.f32 0.03125, %v96_v11 }
  0x98   :  { %v100_v13 = vsub.f32 %v92_v5, %v98_v12 }
  0x9a   :  { %v102_v14 = vsel %vm90_vm0, %v100_v13, 0.0 }
  0x9b   :  { %v104_v15 = vmul.f32 %v102_v14, %v102_v14 }
  0x9d   :  { %107 = vadd.xlane.f32.xlu1 %v104_v15 }
 0x108   :  { %v106_v23 = vpop.xlane.xlu1 %105 }
 0x109   :  { %v109_v25 = vmul.f32 0.03125, %v106_v23 }
 0x10b   :  { %v111_v26 = vadd.f32 1e-05, %v109_v25 }
 0x10d   :  { %464 = vrsqrt.f32 %v111_v26  ;;  %vm119_vm2 = vweird.f32 %v111_v26 }
 0x110   :  { %v108_v27 = vpop.xlane.xlu1 %107 }
 0x111   :  { %v110_v28 = vmul.f32 0.03125, %v108_v27 }
 0x113   :  { %v465_v29 = vpop.eup %464  ;;  %v112_v30 = vadd.f32 1e-05, %v110_v28 }
 0x114   :  { %v114_v31 = vmul.f32 %v465_v29, %v111_v26  ;;  %vm120_vm1 = vweird.f32 %v465_v29 }
 0x115   :  { %466 = vrsqrt.f32 %v112_v30  ;;  %vm121_vm3 = vmor %vm119_vm2, %vm120_vm1  ;;  %vm129_vm5 = vweird.f32 %v112_v30 }
 0x116   :  { %v115_v32 = vmul.f32 %v465_v29, %v114_v31 }
 0x118   :  { %v116_v33 = vmul.f32 0.5, %v115_v32 }
 0x11a   :  { %v117_v34 = vsub.f32 1.5, %v116_v33 }
 0x11b   :  { %v467_v35 = vpop.eup %466 }
 0x11c   :  { %v118_v36 = vmul.f32 %v465_v29, %v117_v34  ;;  %v124_v37 = vmul.f32 %v467_v35, %v112_v30  ;;  %vm130_vm4 = vweird.f32 %v467_v35 }
 0x11d   :  { %vm131_vm6 = vmor %vm129_vm5, %vm130_vm4 }
 0x11e   :  { %v125_v38 = vmul.f32 %v467_v35, %v124_v37  ;;  %v122_v40 = vsel %vm121_vm3, %v465_v29, %v118_v36 }
 0x11f   :  { %v133_v42 = vmul.f32 %v122_v40, %v101_v9 }
 0x120   :  { %v126_v39 = vmul.f32 0.5, %v125_v38 }
 0x121   :  { %v137_v47 = vmul.f32 %v460_v43, %v133_v42 }
 0x122   :  { %v127_v41 = vsub.f32 1.5, %v126_v39 }
 0x123   :  { %v141_v50 = vadd.f32 %v461_v48, %v137_v47 }
 0x124   :  { %v128_v44 = vmul.f32 %v467_v35, %v127_v41 }
 0x126   :  { %v132_v45 = vsel %vm131_vm6, %v467_v35, %v128_v44 }
 0x127   :  { %v134_v46 = vmul.f32 %v132_v45, %v102_v14 }
 0x129   :  { %v138_v49 = vmul.f32 %v460_v43, %v134_v46 }
 0x12b   :  { %v142_v51 = vadd.f32 %v461_v48, %v138_v49 }
 0x12d   :  { %v149_v52 = vpack.c.bf16 %v142_v51, %v141_v50 }
 0x12f   :  { %226 = vmatmul.bf16.vlgmr.msra.gmra.mxu0 %v149_v52 }
 0x1ac   :  { %v227_v62 = vpop.f32.mrf.mxu0 }
 0x1ad   :  { %v228_v63 = vadd.f32 %v462_v60, %v227_v62 }
 0x1af   :  { %v232_v0 = vmul.f32 %v228_v63, %v228_v63 }
 0x1b1   :  { %v234_v1 = vmul.f32 %v232_v0, %v228_v63 }
 0x1b3   :  { %v236_v2 = vmul.f32 0.044715, %v234_v1 }
 0x1b4   :  { %v229_v3 = vpop.f32.mrf.mxu0 }
 0x1b5   :  { %v238_v4 = vadd.f32 %v236_v2, %v228_v63  ;;  %v230_v5 = vadd.f32 %v462_v60, %v229_v3 }
 0x1b7   :  { %v233_v6 = vmul.f32 %v230_v5, %v230_v5  ;;  %v240_v7 = vmul.f32 0.7978846, %v238_v4 }
 0x1b9   :  { %v235_v8 = vmul.f32 %v233_v6, %v230_v5  ;;  %468 = vtanh.f32 %v240_v7 }
 0x1bb   :  { %v237_v9 = vmul.f32 0.044715, %v235_v8 }
 0x1bd   :  { %v239_v10 = vadd.f32 %v237_v9, %v230_v5 }
 0x1bf   :  { %v241_v11 = vmul.f32 0.7978846, %v239_v10  ;;  %v469_v12 = vpop.eup %468 }
 0x1c0   :  { %v244_v13 = vadd.f32 1.0, %v469_v12 }
 0x1c1   :  { %470 = vtanh.f32 %v241_v11 }
 0x1c2   :  { %v246_v16 = vmul.f32 0.5, %v244_v13 }
 0x1c4   :  { %v248_v18 = vmul.f32 %v246_v16, %v228_v63 }
 0x1c7   :  { %v471_v14 = vpop.eup %470 }
 0x1c8   :  { %v245_v15 = vadd.f32 1.0, %v471_v14 }
 0x1ca   :  { %v247_v17 = vmul.f32 0.5, %v245_v15 }
 0x1cc   :  { %v249_v19 = vmul.f32 %v247_v17, %v230_v5 }
 0x1ce   :  { %v252_v20 = vpack.c.bf16 %v249_v19, %v248_v18 }
 0x1d0   :  { %325 = vmatmul.bf16.vlgmr.msra.gmra.mxu1 %v252_v20 }
 0x24d   :  { %v326_v22 = vpop.f32.mrf.mxu1 }
 0x24e   :  { %v342_v23 = vadd.f32 %v326_v22, %v141_v50 }
 0x250   :  { %v346_v24 = vadd.f32 %v463_v21, %v342_v23 }
 0x252   :  { %348 = vst [vmem:[#allocation12] sm:$0xff] %v346_v24 }
 0x255   :  { %v328_v25 = vpop.f32.mrf.mxu1 }
 0x256   :  { %v343_v26 = vadd.f32 %v328_v25, %v142_v51 }
 0x258   :  { %v347_v27 = vadd.f32 %v463_v21, %v343_v26 }
 0x25a   :  { %349 = vst [vmem:[#allocation12 + $0x8] sm:$0xff] %v347_v27 }
 0x25b   :  { %362 = dma.vmem_to_hbm [thread:$0]  %s355_s15, 256, %s357_s18, [#allocation6], %s602_s28, %s602_s28, %s603_s29  }
 0x25c   :  { %598 = dma.done.wait [#allocation6], 256  }
 0x25d   :  { %599 = vsyncadd [#allocation6], 4294967040 }
 0x25e   :  { %367 = vsyncpa [#allocation5], 1 }
 0x25f   :  { %368 = vsyncpa [#allocation8], 1 }
 0x260   :  { %369 = vsyncpa [#allocation11], 1 }
 0x261   :  { %370 = vsyncpa [#allocation6], 1 }

</bundles_post_ra>
